<compile_context>
chip_gen: v6e
topology: v6e:2x2x1
jax: 0.10.0
libtpu: 0.0.40
codegen_flags: <defaults>
</compile_context>

<pallas_src>
import jax
import jax.numpy as jnp
from jax import lax
from jax.experimental import pallas as pl
from jax.experimental.pallas import tpu as pltpu


def _round_up(x, m):
    return ((x + m - 1) // m) * m


def _cdiv(a, b):
    return -(-a // b)


def _wsconv2d_kernel(x_ref, w_ref, b_ref, o_ref):
    """One (Cout-tile, row-tile) step: a single fused-K matmul + bias add.

    x_ref: (TM, K)   bf16  im2col rows (K = KH*KW*Cin on the lane axis)
    w_ref: (K, TN)   bf16  scale-folded, lane-padded weights
    b_ref: (1, TN)   f32   lane-padded bias
    o_ref: (TM, TN)  f32
    """
    acc = jnp.dot(x_ref[...], w_ref[...], preferred_element_type=jnp.float32)
    o_ref[...] = acc + b_ref[...]


def wsconv2d(x, weight, bias, *, stride=1, padding=1):
    """x: (N, Cin, H, W) NCHW.  weight: (Cout, Cin, KH, KW).  bias: (Cout,)."""
    assert stride == 1, "only stride=1 (module default) is implemented"
    N, Cin, H, W = x.shape
    Cout, Cin_w, KH, KW = weight.shape
    assert Cin == Cin_w
    Hout = H + 2 * padding - KH + 1
    Wout = W + 2 * padding - KW + 1
    K = KH * KW * Cin
    M_total = N * Hout * Wout
    scale = float((2.0 / (Cin * KH * KW)) ** 0.5)

    # Lane-dense output channels; widen TN to 256 when it divides evenly.
    LANES = 128
    Cout_p = _round_up(Cout, LANES)
    TN = 256 if Cout_p % 256 == 0 else 128
    n_ct = Cout_p // TN

    # --- glue (plain JAX): NHWC pad + bf16 im2col (K = kh,kw,cin order) ------
    x_nhwc = jnp.transpose(x, (0, 2, 3, 1)).astype(jnp.bfloat16)   # (N,H,W,Cin)
    x_pad = jnp.pad(
        x_nhwc, ((0, 0), (padding, padding), (padding, padding), (0, 0)))
    cols = jnp.concatenate(
        [x_pad[:, kh:kh + Hout, kw:kw + Wout, :]
         for kh in range(KH) for kw in range(KW)],
        axis=-1)                                                    # (N,Hout,Wout,K)
    xcol = cols.reshape(M_total, K)

    # Fold the WS scale into the weights (conv is linear); match im2col K order.
    w_mat = (jnp.transpose(weight, (2, 3, 1, 0)).reshape(K, Cout)
             .astype(jnp.float32) * scale)
    w_mat = jnp.pad(w_mat, ((0, 0), (0, Cout_p - Cout))).astype(jnp.bfloat16)
    b2 = jnp.pad(bias.astype(jnp.float32), (0, Cout_p - Cout)).reshape(1, Cout_p)

    # --- tile sizes from the real per-generation VMEM capacity ---------------
    try:
        vmem_cap = int(pltpu.get_tpu_info().vmem_capacity_bytes)
    except Exception:
        vmem_cap = 64 * 1024 * 1024            # conservative fallback (v7x size)
    budget = int(0.45 * vmem_cap)              # double-buffered working set
    vmem_limit = min(int(0.70 * vmem_cap), 100 * 1024 * 1024)

    w_res = 2 * _round_up(K, 8) * TN * 2                 # weights (bf16, x2 bufs)
    b_res = 2 * 8 * _round_up(TN, 128) * 4                # bias (f32, padded)
    per_row = 2 * _round_up(K, 128) * 2 + 2 * TN * 4      # in (bf16) + out (f32) rows
    TM = (budget - w_res - b_res) // per_row
    TM = max(8, min(TM, _round_up(M_total, 8)))
    TM -= TM % 8
    num_m = _cdiv(M_total, TM)
    # Keep the (parallel, parallel) step count even so both v7x cores get work.
    if (num_m * n_ct) % 2 == 1 and M_total > 8:
        TM = max(8, _round_up(_cdiv(M_total, 2 * num_m), 8))
        num_m = _cdiv(M_total, TM)
    M_pad = num_m * TM
    xcol = jnp.pad(xcol, ((0, M_pad - M_total), (0, 0)))

    flops = 2 * M_total * K * Cout
    bytes_accessed = (2 * xcol.size + 2 * w_mat.size + 4 * b2.size
                      + 4 * M_pad * Cout_p)

    out_flat = pl.pallas_call(
        _wsconv2d_kernel,
        out_shape=jax.ShapeDtypeStruct((M_pad, Cout_p), jnp.float32),
        grid=(n_ct, num_m),                 # M minor -> weights/bias stay resident
        in_specs=[
            pl.BlockSpec((TM, K), lambda c, m: (m, 0)),
            pl.BlockSpec((K, TN), lambda c, m: (0, c)),
            pl.BlockSpec((1, TN), lambda c, m: (0, c)),
        ],
        out_specs=pl.BlockSpec((TM, TN), lambda c, m: (m, c)),
        compiler_params=pltpu.CompilerParams(
            dimension_semantics=("parallel", "parallel"),
            vmem_limit_bytes=int(vmem_limit),
        ),
        cost_estimate=pl.CostEstimate(
            flops=int(flops), transcendentals=0,
            bytes_accessed=int(bytes_accessed)),
    )(xcol, w_mat, b2)

    out = out_flat[:M_total, :Cout].reshape(N, Hout, Wout, Cout)
    return jnp.transpose(out, (0, 3, 1, 2))                 # back to NCHW


def _reference_f32(x, weight, bias, *, padding=1):
    """Exact module semantics in f32."""
    Cout, Cin, KH, KW = weight.shape
    scale = (2.0 / (Cin * KH * KW)) ** 0.5
    y = lax.conv_general_dilated(
        x * scale, weight, window_strides=(1, 1),
        padding=((padding, padding), (padding, padding)),
        dimension_numbers=("NCHW", "OIHW", "NCHW"),
        precision=lax.Precision.HIGHEST)
    return y + bias.reshape(1, -1, 1, 1)


def _reference_bf16(x, weight, bias, *, padding=1):
    """Same bf16-quantized operands the kernel consumes, f32 accumulation."""
    Cout, Cin, KH, KW = weight.shape
    scale = (2.0 / (Cin * KH * KW)) ** 0.5
    xq = x.astype(jnp.bfloat16).astype(jnp.float32)
    wq = (weight * scale).astype(jnp.bfloat16).astype(jnp.float32)
    y = lax.conv_general_dilated(
        xq, wq, window_strides=(1, 1),
        padding=((padding, padding), (padding, padding)),
        dimension_numbers=("NCHW", "OIHW", "NCHW"),
        precision=lax.Precision.HIGHEST)
    return y + bias.reshape(1, -1, 1, 1)


if __name__ == "__main__":
    # Small shapes consistent with WSConv2d(in_channels=4, out_channels=8).
    N, Cin, Cout, H, W = 2, 4, 8, 16, 16
    KH = KW = 3

    key = jax.random.PRNGKey(0)
    k_x, k_w = jax.random.split(key)
    x = jax.random.normal(k_x, (N, Cin, H, W), dtype=jnp.float32)
    weight = jax.random.normal(k_w, (Cout, Cin, KH, KW), dtype=jnp.float32)  # nn.init.normal_
    bias = jnp.zeros((Cout,), dtype=jnp.float32)                             # nn.init.zeros_

    y = jax.block_until_ready(wsconv2d(x, weight, bias))
    assert y.shape == (N, Cout, H, W), y.shape

    # Strict check: same bf16-quantized operands, f32 accumulation.
    y_q = jax.block_until_ready(_reference_bf16(x, weight, bias))
    assert jnp.allclose(y, y_q, rtol=1e-3, atol=1e-3), float(jnp.max(jnp.abs(y - y_q)))

    # Sanity check against the exact f32 module semantics (bf16 quantization noise).
    y_f = jax.block_until_ready(_reference_f32(x, weight, bias))
    assert jnp.allclose(y, y_f, rtol=5e-2, atol=1e-1), float(jnp.max(jnp.abs(y - y_f)))

    print("KERNEL_OK")
</pallas_src>

<mosaic_0001>
module attributes {stable_mosaic.version = 11 : i64} {
  func.func @_wsconv2d_kernel(%arg0: i32, %arg1: i32, %arg2: memref<256x36xbf16, #tpu.memory_space<vmem>>, %arg3: memref<36x128xbf16, #tpu.memory_space<vmem>>, %arg4: memref<1x128xf32, #tpu.memory_space<vmem>>, %arg5: memref<256x128xf32, #tpu.memory_space<vmem>>) attributes {dimension_semantics = [#tpu.dimension_semantics<parallel>, #tpu.dimension_semantics<parallel>], iteration_bounds = array<i64: 1, 2>, scalar_prefetch = 0 : i64, scratch_operands = 0 : i64, tpu.core_type = #tpu.core_type<tc>, window_params = [{transform_indices = @transform_0, window_bounds = array<i64: 256, 36>}, {transform_indices = @transform_1, window_bounds = array<i64: 36, 128>}, {transform_indices = @transform_2, window_bounds = array<i64: 1, 128>}, {transform_indices = @transform_3, window_bounds = array<i64: 256, 128>}]} {
    %c0 = arith.constant 0 : index
    %c0_0 = arith.constant 0 : index
    %0 = vector.load %arg2[%c0, %c0_0] : memref<256x36xbf16, #tpu.memory_space<vmem>>, vector<256x36xbf16>
    %c0_1 = arith.constant 0 : index
    %c0_2 = arith.constant 0 : index
    %1 = vector.load %arg3[%c0_1, %c0_2] : memref<36x128xbf16, #tpu.memory_space<vmem>>, vector<36x128xbf16>
    %cst = arith.constant dense<0.000000e+00> : vector<256x128xf32>
    %2 = tpu.matmul %0, %1, %cst {dimension_numbers = #tpu.dot_dimension_numbers<[1], [0], [0], [1], [0, 0, 1, 1], [], []>} : vector<256x36xbf16>, vector<36x128xbf16>, vector<256x128xf32> -> vector<256x128xf32>
    %c0_3 = arith.constant 0 : index
    %c0_4 = arith.constant 0 : index
    %3 = vector.load %arg4[%c0_3, %c0_4] : memref<1x128xf32, #tpu.memory_space<vmem>>, vector<1x128xf32>
    %4 = vector.broadcast %3 : vector<1x128xf32> to vector<256x128xf32>
    %5 = arith.addf %2, %4 : vector<256x128xf32>
    %c0_5 = arith.constant 0 : index
    %c0_6 = arith.constant 0 : index
    %6 = vector.load %arg5[%c0_5, %c0_6] : memref<256x128xf32, #tpu.memory_space<vmem>>, vector<256x128xf32>
    tpu.vector_store %arg5[%c0_5, %c0_6], %5 {strides = array<i32>} : memref<256x128xf32, #tpu.memory_space<vmem>>, vector<256x128xf32>,
    return
  }
  func.func @transform_0(%arg0: i32, %arg1: i32) -> (i32, i32) {
    %c0_i32 = arith.constant 0 : i32
    %c0_i32_0 = arith.constant 0 : i32
    return %arg1, %c0_i32 : i32, i32
  }
  func.func @transform_1(%arg0: i32, %arg1: i32) -> (i32, i32) {
    %c0_i32 = arith.constant 0 : i32
    %c0_i32_0 = arith.constant 0 : i32
    return %c0_i32, %arg0 : i32, i32
  }
  func.func @transform_2(%arg0: i32, %arg1: i32) -> (i32, i32) {
    %c0_i32 = arith.constant 0 : i32
    %c0_i32_0 = arith.constant 0 : i32
    return %c0_i32, %arg0 : i32, i32
  }
  func.func @transform_3(%arg0: i32, %arg1: i32) -> (i32, i32) {
    %c0_i32 = arith.constant 0 : i32
    return %arg1, %arg0 : i32, i32
  }
}

</mosaic_0001>

<bundles_post_ra>
// kernel: tpu_custom_call.1
= control target key start
LH: loop header
LB: loop body
LE: loop exit
PB: predicated region body
PF: predicated region fallthrough
CT: control target
= control target key end

     0   :  { %8 = vsyncpa [#allocation3], 0  ;;  %s1243_s0 = inlined_call_operand.vmem [shape: bf16[512,36], index: 0, kind: input, shape index: {}]   ;;  %s1244_s1 = inlined_call_operand.vmem [shape: bf16[36,128], index: 1, kind: input, shape index: {}]   ;;  %s1245_s2 = inlined_call_operand.vmem [shape: f32[1,128], index: 2, kind: input, shape index: {}]   ;;  %s1246_s3 = inlined_call_operand.hbm [shape: f32[512,128], index: 3, kind: output, shape index: {}]  }
   0x1   :  { %10 = vsyncpa [#allocation3 + $0x1], 0  ;;  %s1011_s12 = smov 0   ;;  %s1013_s13 = smov 0  }
   0x2   :  { %s1015_s14 = smov 0   ;;  %s1017_s15 = smov 0  }
   0x3   :  { %s1019_s16 = smov 0   ;;  %s1021_s17 = smov 0  }
   0x4 LB: > { %s717_s18 = sadd.s32 4294967295, %s986_s17   ;;  %s718_s19 = sadd.s32 4294967294, %s986_s17   ;;  %s986_s17 = sphi %s1021_s17, %s16_s17   ;;  %s982_s16 = sphi %s1019_s16, %s1253_s16   ;;  %s978_s15 = sphi %s1017_s15, %s1252_s15   ;;  %s974_s14 = sphi %s1015_s14, %s1251_s14   ;;  %s970_s13 = sphi %s1013_s13, %s1250_s13   ;;  %s966_s12 = sphi %s1011_s12, %s1249_s12  }
   0x5   : > { %s25_s20 = sadd.s32 1, %s982_s16  ;;  %s115_s21 = sadd.s32 1, %s974_s14 }
   0x6   : > { %p26_p0 = scmp.ge.s32.totalorder %s25_s20, 2  ;;  %p125_p1 = scmp.ne.s32.totalorder %s974_s14, %s970_s13 }
   0x7   : > { %p126_p2 = scmp.eq.s32.totalorder %s717_s18, 1  ;;  %p131_p3 = scmp.ne.s32.totalorder %s970_s13, %s966_s12 }
   0x8   : > { %s1255_s20 = smov (%p26_p0, %s25_s20), 0  ;;  %p132_p5 = scmp.eq.s32.totalorder %s718_s19, 1 }
   0x9   : > { %p1051_p4 = por %p126_p2, %p125_p1  ;;  %s110_s23 = ssub.s32 %s982_s16, %s1255_s20 }
   0xa   : > { %p723_p6 = scmp.ge.s32.totalorder %s986_s17, 1  ;;  %p113_p7 = scmp.eq.s32.totalorder %s110_s23, 0 }
   0xb   : > { %p1058_p8 = por %p132_p5, %p131_p3  ;;  %p172_p9 = scmp.lt.s32.totalorder %s986_s17, 3 }
   0xc   : > { %s1064_s25 = scalar_select %p113_p7, %s974_s14, %s115_s21  }
   0xd   : > { %p173_p10 = pnand %p723_p6, %p172_p9 }
   0xe   : > { %s725_s30 = sshll.u32 (!%p173_p10), %s978_s15, 5  ;;  %s200_s10 = sand.u32 (!%p173_p10), 1, %s970_s13  }
   0xf   : > { %176 = sbr.rel (%p173_p10) target bundleno = 272 (0x110), region = 32  ;;  %p204_p11 = scmp.lt.s32.totalorder (!%p173_p10), %s725_s30, 63 }
  0x10   : > { %s724_s11 = sshll.u32 (!%p173_p10), %s200_s10, 8  ;;  %s768_s23 = sshll.u32 (!%p173_p10), %s978_s15, 12 }
  0x11   : > { %s1123_s21 = scalar_lea.vmem (!%p173_p10), [#allocation2], %s724_s11  ;;  %s1186_s29 = scalar_lea.hbm (!%p173_p10), %s1246_s3, %s768_s23 }
  0x12   : > { %s618_s26 = sshll.u32 (!%p173_p10), %s1123_s21, 4  ;;  %s1198_s15 = scalar_lea.sflag (!%p173_p10), [#allocation3], %s200_s10  ;;  %s1188_s26 = int_to_ptr.vmem [resolvable:$true] %s618_s26 }
  0x13   : > { %s988_s4 = smov (!%p173_p10), [#allocation2]  }
  0x14   : > { %v891_v0 = vld [vmem:[%s1244_s1 + $0x10] ss:$0 sps:$4 sm:$0x33]   ;;  %vm406_vm0 = vcmask 1041408   ;;  %v892_v1 = vld [vmem:[%s1244_s1 + $0x8] sm:$0xff]   ;;  %v893_v3 = vld [vmem:[%s1244_s1] sm:$0xff]  }
  0x15   : > { %832 = vmatprep.subr.msk.bf16.mxu0 %vm406_vm0, %v891_v0  ;;  %833 = vmatprep.subr.msk.bf16.mxu1 %vm406_vm0, %v891_v0  ;;  %v408_v2 = vsel %vm406_vm0, %v891_v0, 0  ;;  %s1257_s30 = smov (!%p204_p11, %s725_s30), 63  ;;  %vm357_vm1 = vcmask 293888   ;;  %v1119_v20 = vld [vmem:[%s1245_s2] ss:$0 sm:$0xff]  ;;  %s914_s5 = sshll.u32 %s988_s4, 4  ;;  %s915_s5 = int_to_ptr.vmem [resolvable:$false] %s914_s5 }
  0x16   : > { %789 = vmatpush3.bf16.msra.mxu0 %v408_v2  ;;  %829 = vmatpush3.bf16.msra.mxu1 %v408_v2  ;;  %s726_s6 = sshll.u32 %s1257_s30, 2  ;;  %s910_s30 = scalar_lea.vmem %s1188_s26, 4096 }
  0x17   : > { %790 = vmatprep.subr.bf16.mxu0 %v892_v1  ;;  %827 = vmatprep.subr.bf16.mxu1 %v892_v1  ;;  %s1079_s9 = scalar_lea.vmem %s1243_s0, %s726_s6  ;;  %p911_p12 = scmp.ne.s32.totalorder %s1188_s26, %s910_s30 }
  0x18   : > { %v894_v4 = vld [vmem:[%s1079_s9] sm:$0xff]   ;;  %v896_v6 = vld [vmem:[%s1079_s9 + $0x8] sm:$0xff]   ;;  %v898_v8 = vld [vmem:[%s1079_s9 + $0x10] sm:$0xff]   ;;  %s916_s6 = scalar_lea.vmem %s915_s5, 8192  ;;  %p917_p1 = scmp.lt.s32.totalorder %s1188_s26, %s915_s5 }
  0x19   : > { %v895_v5 = vld [vmem:[%s1079_s9 + $0x40] sm:$0xff]   ;;  %794 = vmatprep.mubr.msk.bf16.mxu0 %vm357_vm1, %v894_v4  ;;  %v897_v7 = vld [vmem:[%s1079_s9 + $0x48] sm:$0xff]   ;;  %v899_v9 = vld [vmem:[%s1079_s9 + $0x50] sm:$0xff]   ;;  %p912_p13 = pnand %p911_p12, %p1051_p4  ;;  %p918_p2 = scmp.lt.s32.totalorder %s916_s6, %s910_s30 }
  0x1a   : > { %791 = vmatpush3.bf16.msra.mxu0 %v892_v1  ;;  %830 = vmatpush3.bf16.msra.mxu1 %v892_v1  ;;  %v900_v10 = vld [vmem:[%s1079_s9 + $0x18] sm:$0xff]   ;;  %v902_v12 = vld [vmem:[%s1079_s9 + $0x20] sm:$0xff]   ;;  %v904_v14 = vld [vmem:[%s1079_s9 + $0x28] sm:$0xff]  }
  0x1b   : > { %792 = vmatprep.subr.bf16.mxu0 %v893_v3  ;;  %828 = vmatprep.subr.bf16.mxu1 %v893_v3  ;;  %v901_v11 = vld [vmem:[%s1079_s9 + $0x58] sm:$0xff]   ;;  %v903_v13 = vld [vmem:[%s1079_s9 + $0x60] sm:$0xff]   ;;  %v905_v15 = vld [vmem:[%s1079_s9 + $0x68] sm:$0xff]   ;;  %p913_p0 = pneg %p912_p13  ;;  %p919_p3 = por %p918_p2, %p917_p1 }
  0x1c   : > { %810 = vmatprep.mubr.msk.bf16.mxu1 %vm357_vm1, %v895_v5  ;;  %v906_v16 = vld [vmem:[%s1079_s9 + $0x30] sm:$0xff]   ;;  %v908_v18 = vld [vmem:[%s1079_s9 + $0x38] sm:$0xff]  }
  0x1d   : > { %v907_v17 = vld [vmem:[%s1079_s9 + $0x70] sm:$0xff]   ;;  %v909_v19 = vld [vmem:[%s1079_s9 + $0x78] sm:$0xff]   ;;  %p920_p5 = pnand %p919_p3, %p913_p0 }
  0x1e   : > { %793 = vmatpush3.bf16.msra.mxu0 %v893_v3  ;;  %831 = vmatpush3.bf16.msra.mxu1 %v893_v3 }
  0x21   : > { %795 = vmatmul.mubr.msk.bf16.vlgmr.msra.gmra.mxu0 %vm357_vm1, %v896_v6  ;;  %811 = vmatmul.mubr.msk.bf16.vlgmr.msra.gmra.mxu1 %vm357_vm1, %v897_v7 }
  0x22   : > { %798 = vmatprep.mubr.msk.bf16.mxu0 %vm357_vm1, %v898_v8  ;;  %814 = vmatprep.mubr.msk.bf16.mxu1 %vm357_vm1, %v899_v9 }
  0x29   : > { %799 = vmatmul.mubr.msk.bf16.gmra.mxu0 %vm357_vm1, %v900_v10  ;;  %815 = vmatmul.mubr.msk.bf16.gmra.mxu1 %vm357_vm1, %v901_v11 }
  0x2a   : > { %802 = vmatprep.mubr.msk.bf16.mxu0 %vm357_vm1, %v902_v12  ;;  %818 = vmatprep.mubr.msk.bf16.mxu1 %vm357_vm1, %v903_v13 }
  0x31   : > { %803 = vmatmul.mubr.msk.bf16.gmra.mxu0 %vm357_vm1, %v904_v14  ;;  %819 = vmatmul.mubr.msk.bf16.gmra.mxu1 %vm357_vm1, %v905_v15 }
  0x32   : > { %806 = vmatprep.mubr.msk.bf16.mxu0 %vm357_vm1, %v906_v16  ;;  %822 = vmatprep.mubr.msk.bf16.mxu1 %vm357_vm1, %v907_v17 }
  0x39   : > { %807 = vmatmul.mubr.msk.bf16.gmra.mxu0 %vm357_vm1, %v908_v18  ;;  %823 = vmatmul.mubr.msk.bf16.gmra.mxu1 %vm357_vm1, %v909_v19 }
  0xe1   : > { %v796_v21 = vpop.f32.mrf.mxu0  ;;  %v812_v22 = vpop.f32.mrf.mxu1 }
  0xe2   : > { %v453_v23 = vadd.f32 %v796_v21, %v1119_v20  ;;  %v517_v24 = vadd.f32 %v812_v22, %v1119_v20 }
  0xe3   : > { %v444_v25 = vpop.f32.mrf.mxu0  ;;  %v508_v26 = vpop.f32.mrf.mxu1 }
  0xe4   : > { %573 = vst [vmem:[%s1123_s21 + $0x10] sm:$0xff] %v453_v23  ;;  %589 = vst [vmem:[%s1123_s21 + $0x90] sm:$0xff] %v517_v24  ;;  %v445_v27 = vadd.f32 %v1119_v20, %v444_v25  ;;  %v509_v28 = vadd.f32 %v1119_v20, %v508_v26 }
  0xe5   : > { %v797_v29 = vpop.f32.mrf.mxu0  ;;  %v813_v30 = vpop.f32.mrf.mxu1 }
  0xe6   : > { %571 = vst [vmem:[%s1123_s21] sm:$0xff] %v445_v27  ;;  %587 = vst [vmem:[%s1123_s21 + $0x80] sm:$0xff] %v509_v28  ;;  %v456_v31 = vadd.f32 %v797_v29, %v1119_v20  ;;  %v520_v32 = vadd.f32 %v813_v30, %v1119_v20 }
  0xe7   : > { %v447_v33 = vpop.f32.mrf.mxu0  ;;  %v511_v34 = vpop.f32.mrf.mxu1 }
  0xe8   : > { %574 = vst [vmem:[%s1123_s21 + $0x18] sm:$0xff] %v456_v31  ;;  %590 = vst [vmem:[%s1123_s21 + $0x98] sm:$0xff] %v520_v32  ;;  %v448_v35 = vadd.f32 %v1119_v20, %v447_v33  ;;  %v512_v36 = vadd.f32 %v1119_v20, %v511_v34 }
  0xe9   : > { %v800_v37 = vpop.f32.mrf.mxu0  ;;  %v816_v38 = vpop.f32.mrf.mxu1 }
  0xea   : > { %572 = vst [vmem:[%s1123_s21 + $0x8] sm:$0xff] %v448_v35  ;;  %588 = vst [vmem:[%s1123_s21 + $0x88] sm:$0xff] %v512_v36  ;;  %v469_v39 = vadd.f32 %v800_v37, %v1119_v20  ;;  %v533_v40 = vadd.f32 %v816_v38, %v1119_v20 }
  0xeb   : > { %v460_v41 = vpop.f32.mrf.mxu0  ;;  %v524_v42 = vpop.f32.mrf.mxu1 }
  0xec   : > { %577 = vst [vmem:[%s1123_s21 + $0x30] sm:$0xff] %v469_v39  ;;  %593 = vst [vmem:[%s1123_s21 + $0xb0] sm:$0xff] %v533_v40  ;;  %v461_v43 = vadd.f32 %v1119_v20, %v460_v41  ;;  %v525_v44 = vadd.f32 %v1119_v20, %v524_v42 }
  0xed   : > { %v801_v45 = vpop.f32.mrf.mxu0  ;;  %v817_v46 = vpop.f32.mrf.mxu1 }
  0xee   : > { %575 = vst [vmem:[%s1123_s21 + $0x20] sm:$0xff] %v461_v43  ;;  %591 = vst [vmem:[%s1123_s21 + $0xa0] sm:$0xff] %v525_v44  ;;  %v472_v47 = vadd.f32 %v801_v45, %v1119_v20  ;;  %v536_v48 = vadd.f32 %v817_v46, %v1119_v20 }
  0xef   : > { %v463_v49 = vpop.f32.mrf.mxu0  ;;  %v527_v50 = vpop.f32.mrf.mxu1 }
  0xf0   : > { %578 = vst [vmem:[%s1123_s21 + $0x38] sm:$0xff] %v472_v47  ;;  %594 = vst [vmem:[%s1123_s21 + $0xb8] sm:$0xff] %v536_v48  ;;  %v464_v51 = vadd.f32 %v1119_v20, %v463_v49  ;;  %v528_v52 = vadd.f32 %v1119_v20, %v527_v50 }
  0xf1   : > { %v804_v53 = vpop.f32.mrf.mxu0  ;;  %v820_v54 = vpop.f32.mrf.mxu1 }
  0xf2   : > { %576 = vst [vmem:[%s1123_s21 + $0x28] sm:$0xff] %v464_v51  ;;  %592 = vst [vmem:[%s1123_s21 + $0xa8] sm:$0xff] %v528_v52  ;;  %v485_v55 = vadd.f32 %v804_v53, %v1119_v20  ;;  %v549_v56 = vadd.f32 %v820_v54, %v1119_v20 }
  0xf3   : > { %v476_v57 = vpop.f32.mrf.mxu0  ;;  %v540_v58 = vpop.f32.mrf.mxu1 }
  0xf4   : > { %581 = vst [vmem:[%s1123_s21 + $0x50] sm:$0xff] %v485_v55  ;;  %597 = vst [vmem:[%s1123_s21 + $0xd0] sm:$0xff] %v549_v56  ;;  %v477_v59 = vadd.f32 %v1119_v20, %v476_v57  ;;  %v541_v60 = vadd.f32 %v1119_v20, %v540_v58 }
  0xf5   : > { %v805_v61 = vpop.f32.mrf.mxu0  ;;  %v821_v62 = vpop.f32.mrf.mxu1 }
  0xf6   : > { %579 = vst [vmem:[%s1123_s21 + $0x40] sm:$0xff] %v477_v59  ;;  %595 = vst [vmem:[%s1123_s21 + $0xc0] sm:$0xff] %v541_v60  ;;  %v488_v63 = vadd.f32 %v805_v61, %v1119_v20  ;;  %v552_v0 = vadd.f32 %v821_v62, %v1119_v20 }
  0xf7   : > { %v479_v1 = vpop.f32.mrf.mxu0  ;;  %v543_v2 = vpop.f32.mrf.mxu1 }
  0xf8   : > { %582 = vst [vmem:[%s1123_s21 + $0x58] sm:$0xff] %v488_v63  ;;  %598 = vst [vmem:[%s1123_s21 + $0xd8] sm:$0xff] %v552_v0  ;;  %v480_v3 = vadd.f32 %v1119_v20, %v479_v1  ;;  %v544_v4 = vadd.f32 %v1119_v20, %v543_v2 }
  0xf9   : > { %v808_v5 = vpop.f32.mrf.mxu0  ;;  %v824_v6 = vpop.f32.mrf.mxu1 }
  0xfa   : > { %580 = vst [vmem:[%s1123_s21 + $0x48] sm:$0xff] %v480_v3  ;;  %596 = vst [vmem:[%s1123_s21 + $0xc8] sm:$0xff] %v544_v4  ;;  %v501_v7 = vadd.f32 %v808_v5, %v1119_v20  ;;  %v565_v8 = vadd.f32 %v824_v6, %v1119_v20 }
  0xfb   : > { %v492_v9 = vpop.f32.mrf.mxu0  ;;  %v556_v10 = vpop.f32.mrf.mxu1 }
  0xfc   : > { %585 = vst [vmem:[%s1123_s21 + $0x70] sm:$0xff] %v501_v7  ;;  %601 = vst [vmem:[%s1123_s21 + $0xf0] sm:$0xff] %v565_v8  ;;  %v493_v11 = vadd.f32 %v1119_v20, %v492_v9  ;;  %v557_v12 = vadd.f32 %v1119_v20, %v556_v10 }
  0xfd   : > { %v809_v13 = vpop.f32.mrf.mxu0  ;;  %v825_v14 = vpop.f32.mrf.mxu1 }
  0xfe   : > { %583 = vst [vmem:[%s1123_s21 + $0x60] sm:$0xff] %v493_v11  ;;  %599 = vst [vmem:[%s1123_s21 + $0xe0] sm:$0xff] %v557_v12  ;;  %v504_v15 = vadd.f32 %v809_v13, %v1119_v20  ;;  %v568_v16 = vadd.f32 %v825_v14, %v1119_v20 }
  0xff   : > { %v495_v17 = vpop.f32.mrf.mxu0  ;;  %v559_v18 = vpop.f32.mrf.mxu1 }
 0x100   : > { %586 = vst [vmem:[%s1123_s21 + $0x78] sm:$0xff] %v504_v15  ;;  %602 = vst [vmem:[%s1123_s21 + $0xf8] sm:$0xff] %v568_v16  ;;  %v496_v19 = vadd.f32 %v1119_v20, %v495_v17  ;;  %v560_v21 = vadd.f32 %v1119_v20, %v559_v18 }
 0x102   : > { %584 = vst [vmem:[%s1123_s21 + $0x68] sm:$0xff] %v496_v19  ;;  %600 = vst [vmem:[%s1123_s21 + $0xe8] sm:$0xff] %v560_v21 }
 0x103   : > { %923 = shalt.err (!%p920_p5)
}
 0x104   : > { %s924_s7 = scalar_lea.hbm %s1186_s29, 4096  ;;  %s928_s10 = scalar_lea.hbm %s1246_s3, 8192 }
 0x105   : > { %p925_p6 = scmp.ne.s32.totalorder %s1186_s29, %s924_s7  ;;  %p929_p10 = scmp.lt.s32.totalorder %s1186_s29, %s1246_s3 }
 0x106   : > { %p930_p11 = scmp.lt.s32.totalorder %s928_s10, %s924_s7 }
 0x107   : > { %p926_p7 = pnand %p925_p6, %p1051_p4 }
 0x108   : > { %p931_p12 = por %p930_p11, %p929_p10 }
 0x109   : > { %p927_p9 = pneg %p926_p7 }
 0x10b   : > { %p932_p13 = pnand %p931_p12, %p927_p9 }
 0x10d   : > { %935 = shalt.err (!%p932_p13)
}
 0x10e   : > { %s989_s19 = smov 128   ;;  %s990_s21 = smov 8  }
 0x10f   : > { %834 = dma.vmem_to_hbm [thread:$0]  (%p1051_p4), %s1188_s26, 4096, %s1186_s29, %s1198_s15, %s989_s19, %s989_s19, %s990_s21  }
 0x110 PF: > { %p840_p0 = scmp.ge.s32.totalorder %s986_s17, 2  ;;  %s633_s23 = sand.u32 1, %s966_s12  }
 0x111   : > { %s634_s27 = scalar_lea.sflag [#allocation3], %s633_s23 }
 0x112   : > { %p837_p1 = pnand %p840_p0, %p1058_p8 }
 0x114   : > { %p838_p2 = pneg %p837_p1 }
 0x116   : > { %961 = dma.done.wait (%p838_p2), %s634_s27, 4096  }
 0x117   : > { %963 = vsyncadd (%p838_p2), %s634_s27, 4294963200  ;;  %s16_s17 = sadd.s32 1, %s986_s17   ;;  %s1249_s12 = smov %s970_s13 }
 0x118   : > { %p13_p3 = scmp.ge.s32.totalorder %s16_s17, 4   ;;  %s1250_s13 = smov %s974_s14 }
 0x119   : > { %s1251_s14 = smov %s1064_s25  ;;  %s1252_s15 = smov %s982_s16 }
 0x11a   : > { %s1253_s16 = smov %s1255_s20  ;;  %15 = sbr.rel (!%p13_p3) target bundleno = 4 (0x4), region = 73 }
 0x11f   :  { %639 = vsyncpa [#allocation3], 1 }
 0x120   :  { %641 = vsyncpa [#allocation3 + $0x1], 1 }

</bundles_post_ra>
